<compile_context>
chip_gen: v7x
topology: tpu7x:2x2x1
jax: 0.10.0
libtpu: 0.0.40
codegen_flags: <defaults>
</compile_context>

<pallas_src>
import functools

import jax
import jax.numpy as jnp
from jax.experimental import pallas as pl
from jax.experimental.pallas import tpu as pltpu

EPS = 1e-5


def _round_up(v, m):
    return (v + m - 1) // m * m


def _vmem_capacity_bytes(default=64 << 20):
    try:
        return int(pltpu.get_tpu_info().vmem_capacity_bytes)
    except Exception:  # query unavailable -> conservative (v7x-sized) default
        return default


def prenorm_linear_kernel(x_ref, gamma_ref, beta_ref, w_ref, b_ref, o_ref,
                          xn_ref, *, d_real, d_pad):
    # x: (T, Dp)  gamma/beta: (1, Dp)  w: (Dp, tn)  b: (1, tn)  o: (T, tn)
    # xn_ref: (T, Dp) VMEM scratch holding the LayerNorm result in w's dtype.

    @pl.when(pl.program_id(1) == 0)
    def _layernorm():
        x = x_ref[...].astype(jnp.float32)
        gamma = gamma_ref[...].astype(jnp.float32)
        beta = beta_ref[...].astype(jnp.float32)
        inv_d = jnp.float32(1.0 / d_real)

        mean = jnp.sum(x, axis=-1, keepdims=True) * inv_d
        centered = x - mean
        ssq = jnp.sum(centered * centered, axis=-1, keepdims=True)
        if d_pad != d_real:
            # Padded lanes hold x == 0, so `centered` is exactly -mean there.
            # Remove their contribution with a scalar correction instead of a
            # full-tile iota/compare/select mask.
            ssq = ssq - jnp.float32(d_pad - d_real) * (mean * mean)
        var = ssq * inv_d
        # gamma/beta are zero in padded lanes -> xn is zero there (and the
        # padded weight rows are zero anyway).
        xn = centered * jax.lax.rsqrt(var + EPS) * gamma + beta
        xn_ref[...] = xn.astype(xn_ref.dtype)

    # fn(x): Linear(dim -> dim) column slab on the MXU, f32 accumulation.
    y = jnp.dot(xn_ref[...], w_ref[...], preferred_element_type=jnp.float32)
    o_ref[...] = (y + b_ref[...].astype(jnp.float32)).astype(o_ref.dtype)


def prenorm_fn(x, gamma, beta, w, b, *, tile_rows=512, w_dtype=jnp.bfloat16):
    """x: (B, N, D) -> (B, N, D).  LayerNorm(dim=-1, eps=1e-5) then Linear(D, D).

    w_dtype is the MXU input dtype for the normalized activations and the
    weight (default bf16; pass jnp.float32 for full-precision matmul).
    """
    B, N, D = x.shape
    rows = B * N
    x_itm = jnp.dtype(x.dtype).itemsize
    w_itm = jnp.dtype(w_dtype).itemsize

    d_pad = D if D % 128 == 0 else _round_up(D, 128)   # lane-dense feature dim
    needs_dpad = d_pad != D

    vmem_cap = _vmem_capacity_bytes()
    vmem_target = vmem_cap * 3 // 4                    # headroom for compiler temps

    # ---- output-column tiling of the weight ------------------------------
    # Keep the whole (Dp, Dp) weight resident when it comfortably fits (sized
    # pessimistically for double buffering); otherwise stream lane-dense
    # (Dp, tn) column slabs so large D fits v7x's 64 MiB VMEM.
    if 2 * d_pad * d_pad * w_itm <= vmem_target // 2:
        tn = d_pad
    else:
        tn = (vmem_target // 3) // (2 * d_pad * w_itm)
        tn = max(256, tn // 128 * 128)
        tn = min(tn, d_pad)
    n_col = pl.cdiv(d_pad, tn)
    w_bytes = 2 * d_pad * tn * w_itm                   # pessimistic (dbuf) weight

    # ---- row tiling -------------------------------------------------------
    def _tile_bytes(t):
        return (2 * t * d_pad * x_itm                  # x, double buffered
                + 2 * t * tn * x_itm                   # out, double buffered
                + t * d_pad * w_itm                    # xn scratch
                + 2 * t * d_pad * 4                    # f32 LayerNorm temporaries
                + t * tn * 4)                          # f32 matmul accumulator

    tile = max(64, min(tile_rows, 4096))
    if rows >= 512:
        # Keep at least two row tiles so both v7x TensorCores get work.
        tile = min(tile, _round_up(pl.cdiv(rows, 2), 256))
    while tile > 64 and w_bytes + _tile_bytes(tile) > vmem_target:
        tile //= 2
    if rows <= tile:
        tile = rows                                    # full-extent row block
    else:
        tile = max(8, tile // 8 * 8)
    n_row = pl.cdiv(rows, tile)                        # partial last tile clipped

    need = w_bytes + _tile_bytes(tile) + 8 * d_pad * 4
    vmem_limit = int(min(vmem_cap, max(need * 5 // 4, 32 << 20)))

    # ---- operand preparation ---------------------------------------------
    # Feature dim padded only when D % 128 != 0; rows never padded (Pallas
    # clips the partial last row tile), so no extra HBM passes when aligned.
    x2 = x.reshape(rows, D)
    if needs_dpad:
        x2 = jnp.pad(x2, ((0, 0), (0, d_pad - D)))

    def _row(v):
        v = v.reshape(1, D).astype(jnp.float32)
        return jnp.pad(v, ((0, 0), (0, d_pad - D))) if needs_dpad else v

    gamma2, beta2, b2 = _row(gamma), _row(beta), _row(b)
    w2 = jnp.pad(w, ((0, d_pad - D), (0, d_pad - D))) if needs_dpad else w
    w2 = w2.astype(w_dtype)                            # cast ONCE, outside

    kernel = functools.partial(prenorm_linear_kernel, d_real=D, d_pad=d_pad)
    out_shape = jax.ShapeDtypeStruct((rows, d_pad), x.dtype)

    def _spec(shape, index_map, resident):
        if resident:
            # Constant-index operand: one VMEM buffer, DMA'd once.
            return pl.BlockSpec(shape, index_map, pipeline_mode=pl.Buffered(1))
        return pl.BlockSpec(shape, index_map)

    def build(single_buffer_resident):
        res = single_buffer_resident
        grid_spec = pltpu.PrefetchScalarGridSpec(
            num_scalar_prefetch=0,
            grid=(n_row, n_col),
            in_specs=[
                # x tile; sweep pipeline_mode=pl.Buffered(3) if DMA is exposed
                # at small D (mem-bound regime).
                pl.BlockSpec((tile, d_pad), lambda i, j: (i, 0)),
                _spec((1, d_pad), lambda i, j: (0, 0), res),                 # gamma
                _spec((1, d_pad), lambda i, j: (0, 0), res),                 # beta
                _spec((d_pad, tn), lambda i, j: (0, j), res and n_col == 1),  # w
                _spec((1, tn), lambda i, j: (0, j), res and n_col == 1),     # bias
            ],
            out_specs=pl.BlockSpec((tile, tn), lambda i, j: (i, j)),
            scratch_shapes=[pltpu.VMEM((tile, d_pad), w_dtype)],             # xn
        )
        return pl.pallas_call(
            kernel,
            out_shape=out_shape,
            grid_spec=grid_spec,
            compiler_params=pltpu.CompilerParams(
                dimension_semantics=("parallel", "arbitrary"),
                vmem_limit_bytes=vmem_limit),
        )

    try:
        out = build(True)(x2, gamma2, beta2, w2, b2)
    except Exception:
        # Fallback for Pallas versions that reject single buffering.
        out = build(False)(x2, gamma2, beta2, w2, b2)

    if needs_dpad:
        out = out[:, :D]
    return out.reshape(B, N, D)


def prenorm_ref(x, gamma, beta, w, b, *, w_dtype=jnp.bfloat16):
    """Pure-JAX reference mirroring the kernel's compute dtypes."""
    xf = x.astype(jnp.float32)
    mean = jnp.mean(xf, axis=-1, keepdims=True)
    var = jnp.mean((xf - mean) ** 2, axis=-1, keepdims=True)
    xn = ((xf - mean) * jax.lax.rsqrt(var + EPS)) * gamma.astype(jnp.float32) \
        + beta.astype(jnp.float32)
    y = jnp.dot(xn.astype(w_dtype), w.astype(w_dtype),
                preferred_element_type=jnp.float32)
    return (y + b.astype(jnp.float32)).astype(x.dtype)


if __name__ == "__main__":
    key = jax.random.PRNGKey(0)
    B, N, D = 2, 8, 32
    kx, kw, kb, kg, kbe = jax.random.split(key, 5)

    x = jax.random.normal(kx, (B, N, D), dtype=jnp.float32)

    # LayerNorm params (torch init: gamma=1, beta=0) -- perturb deterministically.
    gamma = jnp.ones((D,), jnp.float32) + 0.01 * jax.random.normal(kg, (D,))
    beta = 0.01 * jax.random.normal(kbe, (D,))

    # fn = Linear(D, D), deterministic synthetic weights.
    w = jax.random.normal(kw, (D, D), dtype=jnp.float32) * (1.0 / jnp.sqrt(D))
    b = 0.1 * jax.random.normal(kb, (D,), dtype=jnp.float32)

    out = prenorm_fn(x, gamma, beta, w, b)
    out = jax.block_until_ready(out)

    ref = prenorm_ref(x, gamma, beta, w, b)
    assert out.shape == (B, N, D)
    assert jnp.allclose(out, ref, atol=5e-3, rtol=5e-3), "mismatch vs reference"

    print("KERNEL_OK")
</pallas_src>

<mosaic_0001>
module attributes {stable_mosaic.version = 11 : i64} {
  func.func @prenorm_linear_kernel(%arg0: i32, %arg1: i32, %arg2: memref<16x128xf32, #tpu.memory_space<vmem>>, %arg3: memref<1x128xf32, #tpu.memory_space<vmem>>, %arg4: memref<1x128xf32, #tpu.memory_space<vmem>>, %arg5: memref<128x128xbf16, #tpu.memory_space<vmem>>, %arg6: memref<1x128xf32, #tpu.memory_space<vmem>>, %arg7: memref<16x128xf32, #tpu.memory_space<vmem>>, %arg8: memref<16x128xbf16, #tpu.memory_space<vmem>>) attributes {dimension_semantics = [#tpu.dimension_semantics<parallel>, #tpu.dimension_semantics<arbitrary>], iteration_bounds = array<i64: 1, 1>, scalar_prefetch = 0 : i64, scratch_operands = 1 : i64, tpu.core_type = #tpu.core_type<tc>, window_params = [{transform_indices = @transform_0, window_bounds = array<i64: 16, 128>}, {pipeline_mode = #tpu.pipeline_mode<synchronous>, transform_indices = @transform_1, window_bounds = array<i64: 1, 128>}, {pipeline_mode = #tpu.pipeline_mode<synchronous>, transform_indices = @transform_2, window_bounds = array<i64: 1, 128>}, {pipeline_mode = #tpu.pipeline_mode<synchronous>, transform_indices = @transform_3, window_bounds = array<i64: 128, 128>}, {pipeline_mode = #tpu.pipeline_mode<synchronous>, transform_indices = @transform_4, window_bounds = array<i64: 1, 128>}, {transform_indices = @transform_5, window_bounds = array<i64: 16, 128>}]} {
    %c0_i32 = arith.constant 0 : i32
    %0 = arith.cmpi eq, %arg1, %c0_i32 : i32
    %1 = arith.extui %0 : i1 to i32
    %c0_i32_0 = arith.constant 0 : i32
    %2 = arith.cmpi ne, %1, %c0_i32_0 : i32
    scf.if %2 {
      %c0_8 = arith.constant 0 : index
      %c0_9 = arith.constant 0 : index
      %10 = vector.load %arg2[%c0_8, %c0_9] : memref<16x128xf32, #tpu.memory_space<vmem>>, vector<16x128xf32>
      %c0_10 = arith.constant 0 : index
      %c0_11 = arith.constant 0 : index
      %11 = vector.load %arg3[%c0_10, %c0_11] : memref<1x128xf32, #tpu.memory_space<vmem>>, vector<1x128xf32>
      %c0_12 = arith.constant 0 : index
      %c0_13 = arith.constant 0 : index
      %12 = vector.load %arg4[%c0_12, %c0_13] : memref<1x128xf32, #tpu.memory_space<vmem>>, vector<1x128xf32>
      %cst_14 = arith.constant dense<0.000000e+00> : vector<16xf32>
      %13 = vector.multi_reduction <add>, %10, %cst_14 [1] : vector<16x128xf32> to vector<16xf32>
      %14 = vector.shape_cast %13 : vector<16xf32> to vector<16x1xf32>
      %cst_15 = arith.constant 3.125000e-02 : f32
      %15 = vector.broadcast %cst_15 : f32 to vector<16x1xf32>
      %16 = arith.mulf %14, %15 : vector<16x1xf32>
      %17 = vector.broadcast %16 : vector<16x1xf32> to vector<16x128xf32>
      %18 = arith.subf %10, %17 : vector<16x128xf32>
      %19 = arith.mulf %18, %18 : vector<16x128xf32>
      %cst_16 = arith.constant dense<0.000000e+00> : vector<16xf32>
      %20 = vector.multi_reduction <add>, %19, %cst_16 [1] : vector<16x128xf32> to vector<16xf32>
      %21 = vector.shape_cast %20 : vector<16xf32> to vector<16x1xf32>
      %22 = arith.mulf %16, %16 : vector<16x1xf32>
      %cst_17 = arith.constant 9.600000e+01 : f32
      %23 = vector.broadcast %cst_17 : f32 to vector<16x1xf32>
      %24 = arith.mulf %23, %22 : vector<16x1xf32>
      %25 = arith.subf %21, %24 : vector<16x1xf32>
      %cst_18 = arith.constant 3.125000e-02 : f32
      %26 = vector.broadcast %cst_18 : f32 to vector<16x1xf32>
      %27 = arith.mulf %25, %26 : vector<16x1xf32>
      %cst_19 = arith.constant 9.99999974E-6 : f32
      %28 = vector.broadcast %cst_19 : f32 to vector<16x1xf32>
      %29 = arith.addf %27, %28 : vector<16x1xf32>
      %30 = math.rsqrt %29 : vector<16x1xf32>
      %31 = vector.broadcast %30 : vector<16x1xf32> to vector<16x128xf32>
      %32 = arith.mulf %18, %31 : vector<16x128xf32>
      %33 = vector.broadcast %11 : vector<1x128xf32> to vector<16x128xf32>
      %34 = arith.mulf %32, %33 : vector<16x128xf32>
      %35 = vector.broadcast %12 : vector<1x128xf32> to vector<16x128xf32>
      %36 = arith.addf %34, %35 : vector<16x128xf32>
      %37 = arith.truncf %36 : vector<16x128xf32> to vector<16x128xbf16>
      %c0_20 = arith.constant 0 : index
      %c0_21 = arith.constant 0 : index
      %38 = vector.load %arg8[%c0_20, %c0_21] : memref<16x128xbf16, #tpu.memory_space<vmem>>, vector<16x128xbf16>
      tpu.vector_store %arg8[%c0_20, %c0_21], %37 {strides = array<i32>} : memref<16x128xbf16, #tpu.memory_space<vmem>>, vector<16x128xbf16>,
    } else {
    }
    %c0 = arith.constant 0 : index
    %c0_1 = arith.constant 0 : index
    %3 = vector.load %arg8[%c0, %c0_1] : memref<16x128xbf16, #tpu.memory_space<vmem>>, vector<16x128xbf16>
    %c0_2 = arith.constant 0 : index
    %c0_3 = arith.constant 0 : index
    %4 = vector.load %arg5[%c0_2, %c0_3] : memref<128x128xbf16, #tpu.memory_space<vmem>>, vector<128x128xbf16>
    %cst = arith.constant dense<0.000000e+00> : vector<16x128xf32>
    %5 = tpu.matmul %3, %4, %cst {dimension_numbers = #tpu.dot_dimension_numbers<[1], [0], [0], [1], [0, 0, 1, 1], [], []>} : vector<16x128xbf16>, vector<128x128xbf16>, vector<16x128xf32> -> vector<16x128xf32>
    %c0_4 = arith.constant 0 : index
    %c0_5 = arith.constant 0 : index
    %6 = vector.load %arg6[%c0_4, %c0_5] : memref<1x128xf32, #tpu.memory_space<vmem>>, vector<1x128xf32>
    %7 = vector.broadcast %6 : vector<1x128xf32> to vector<16x128xf32>
    %8 = arith.addf %5, %7 : vector<16x128xf32>
    %c0_6 = arith.constant 0 : index
    %c0_7 = arith.constant 0 : index
    %9 = vector.load %arg7[%c0_6, %c0_7] : memref<16x128xf32, #tpu.memory_space<vmem>>, vector<16x128xf32>
    tpu.vector_store %arg7[%c0_6, %c0_7], %8 {strides = array<i32>} : memref<16x128xf32, #tpu.memory_space<vmem>>, vector<16x128xf32>,
    return
  }
  func.func @transform_0(%arg0: i32, %arg1: i32) -> (i32, i32) {
    %c0_i32 = arith.constant 0 : i32
    %c0_i32_0 = arith.constant 0 : i32
    return %arg0, %c0_i32 : i32, i32
  }
  func.func @transform_1(%arg0: i32, %arg1: i32) -> (i32, i32) {
    %c0_i32 = arith.constant 0 : i32
    %c0_i32_0 = arith.constant 0 : i32
    %c0_i32_1 = arith.constant 0 : i32
    return %c0_i32, %c0_i32_0 : i32, i32
  }
  func.func @transform_2(%arg0: i32, %arg1: i32) -> (i32, i32) {
    %c0_i32 = arith.constant 0 : i32
    %c0_i32_0 = arith.constant 0 : i32
    %c0_i32_1 = arith.constant 0 : i32
    return %c0_i32, %c0_i32_0 : i32, i32
  }
  func.func @transform_3(%arg0: i32, %arg1: i32) -> (i32, i32) {
    %c0_i32 = arith.constant 0 : i32
    %c0_i32_0 = arith.constant 0 : i32
    return %c0_i32, %arg1 : i32, i32
  }
  func.func @transform_4(%arg0: i32, %arg1: i32) -> (i32, i32) {
    %c0_i32 = arith.constant 0 : i32
    %c0_i32_0 = arith.constant 0 : i32
    return %c0_i32, %arg1 : i32, i32
  }
  func.func @transform_5(%arg0: i32, %arg1: i32) -> (i32, i32) {
    %c0_i32 = arith.constant 0 : i32
    return %arg0, %arg1 : i32, i32
  }
}

module attributes {stable_mosaic.version = 11 : i64} {
  func.func @prenorm_linear_kernel(%arg0: i32, %arg1: i32, %arg2: memref<16x128xf32, #tpu.memory_space<vmem>>, %arg3: memref<1x128xf32, #tpu.memory_space<vmem>>, %arg4: memref<1x128xf32, #tpu.memory_space<vmem>>, %arg5: memref<128x128xbf16, #tpu.memory_space<vmem>>, %arg6: memref<1x128xf32, #tpu.memory_space<vmem>>, %arg7: memref<16x128xf32, #tpu.memory_space<vmem>>, %arg8: memref<16x128xbf16, #tpu.memory_space<vmem>>) attributes {dimension_semantics = [#tpu.dimension_semantics<parallel>, #tpu.dimension_semantics<arbitrary>], iteration_bounds = array<i64: 1, 1>, scalar_prefetch = 0 : i64, scratch_operands = 1 : i64, tpu.core_type = #tpu.core_type<tc>, window_params = [{transform_indices = @transform_0, window_bounds = array<i64: 16, 128>}, {pipeline_mode = #tpu.pipeline_mode<synchronous>, transform_indices = @transform_1, window_bounds = array<i64: 1, 128>}, {pipeline_mode = #tpu.pipeline_mode<synchronous>, transform_indices = @transform_2, window_bounds = array<i64: 1, 128>}, {transform_indices = @transform_3, window_bounds = array<i64: 128, 128>}, {transform_indices = @transform_4, window_bounds = array<i64: 1, 128>}, {transform_indices = @transform_5, window_bounds = array<i64: 16, 128>}]} {
    %c0_i32 = arith.constant 0 : i32
    %0 = arith.cmpi eq, %arg1, %c0_i32 : i32
    %1 = arith.extui %0 : i1 to i32
    %c0_i32_0 = arith.constant 0 : i32
    %2 = arith.cmpi ne, %1, %c0_i32_0 : i32
    scf.if %2 {
      %c0_8 = arith.constant 0 : index
      %c0_9 = arith.constant 0 : index
      %10 = vector.load %arg2[%c0_8, %c0_9] : memref<16x128xf32, #tpu.memory_space<vmem>>, vector<16x128xf32>
      %c0_10 = arith.constant 0 : index
      %c0_11 = arith.constant 0 : index
      %11 = vector.load %arg3[%c0_10, %c0_11] : memref<1x128xf32, #tpu.memory_space<vmem>>, vector<1x128xf32>
      %c0_12 = arith.constant 0 : index
      %c0_13 = arith.constant 0 : index
      %12 = vector.load %arg4[%c0_12, %c0_13] : memref<1x128xf32, #tpu.memory_space<vmem>>, vector<1x128xf32>
      %cst_14 = arith.constant dense<0.000000e+00> : vector<16xf32>
      %13 = vector.multi_reduction <add>, %10, %cst_14 [1] : vector<16x128xf32> to vector<16xf32>
      %14 = vector.shape_cast %13 : vector<16xf32> to vector<16x1xf32>
      %cst_15 = arith.constant 3.125000e-02 : f32
      %15 = vector.broadcast %cst_15 : f32 to vector<16x1xf32>
      %16 = arith.mulf %14, %15 : vector<16x1xf32>
      %17 = vector.broadcast %16 : vector<16x1xf32> to vector<16x128xf32>
      %18 = arith.subf %10, %17 : vector<16x128xf32>
      %19 = arith.mulf %18, %18 : vector<16x128xf32>
      %cst_16 = arith.constant dense<0.000000e+00> : vector<16xf32>
      %20 = vector.multi_reduction <add>, %19, %cst_16 [1] : vector<16x128xf32> to vector<16xf32>
      %21 = vector.shape_cast %20 : vector<16xf32> to vector<16x1xf32>
      %22 = arith.mulf %16, %16 : vector<16x1xf32>
      %cst_17 = arith.constant 9.600000e+01 : f32
      %23 = vector.broadcast %cst_17 : f32 to vector<16x1xf32>
      %24 = arith.mulf %23, %22 : vector<16x1xf32>
      %25 = arith.subf %21, %24 : vector<16x1xf32>
      %cst_18 = arith.constant 3.125000e-02 : f32
      %26 = vector.broadcast %cst_18 : f32 to vector<16x1xf32>
      %27 = arith.mulf %25, %26 : vector<16x1xf32>
      %cst_19 = arith.constant 9.99999974E-6 : f32
      %28 = vector.broadcast %cst_19 : f32 to vector<16x1xf32>
      %29 = arith.addf %27, %28 : vector<16x1xf32>
      %30 = math.rsqrt %29 : vector<16x1xf32>
      %31 = vector.broadcast %30 : vector<16x1xf32> to vector<16x128xf32>
      %32 = arith.mulf %18, %31 : vector<16x128xf32>
      %33 = vector.broadcast %11 : vector<1x128xf32> to vector<16x128xf32>
      %34 = arith.mulf %32, %33 : vector<16x128xf32>
      %35 = vector.broadcast %12 : vector<1x128xf32> to vector<16x128xf32>
      %36 = arith.addf %34, %35 : vector<16x128xf32>
      %37 = arith.truncf %36 : vector<16x128xf32> to vector<16x128xbf16>
      %c0_20 = arith.constant 0 : index
      %c0_21 = arith.constant 0 : index
      %38 = vector.load %arg8[%c0_20, %c0_21] : memref<16x128xbf16, #tpu.memory_space<vmem>>, vector<16x128xbf16>
      tpu.vector_store %arg8[%c0_20, %c0_21], %37 {strides = array<i32>} : memref<16x128xbf16, #tpu.memory_space<vmem>>, vector<16x128xbf16>,
    } else {
    }
    %c0 = arith.constant 0 : index
    %c0_1 = arith.constant 0 : index
    %3 = vector.load %arg8[%c0, %c0_1] : memref<16x128xbf16, #tpu.memory_space<vmem>>, vector<16x128xbf16>
    %c0_2 = arith.constant 0 : index
    %c0_3 = arith.constant 0 : index
    %4 = vector.load %arg5[%c0_2, %c0_3] : memref<128x128xbf16, #tpu.memory_space<vmem>>, vector<128x128xbf16>
    %cst = arith.constant dense<0.000000e+00> : vector<16x128xf32>
    %5 = tpu.matmul %3, %4, %cst {dimension_numbers = #tpu.dot_dimension_numbers<[1], [0], [0], [1], [0, 0, 1, 1], [], []>} : vector<16x128xbf16>, vector<128x128xbf16>, vector<16x128xf32> -> vector<16x128xf32>
    %c0_4 = arith.constant 0 : index
    %c0_5 = arith.constant 0 : index
    %6 = vector.load %arg6[%c0_4, %c0_5] : memref<1x128xf32, #tpu.memory_space<vmem>>, vector<1x128xf32>
    %7 = vector.broadcast %6 : vector<1x128xf32> to vector<16x128xf32>
    %8 = arith.addf %5, %7 : vector<16x128xf32>
    %c0_6 = arith.constant 0 : index
    %c0_7 = arith.constant 0 : index
    %9 = vector.load %arg7[%c0_6, %c0_7] : memref<16x128xf32, #tpu.memory_space<vmem>>, vector<16x128xf32>
    tpu.vector_store %arg7[%c0_6, %c0_7], %8 {strides = array<i32>} : memref<16x128xf32, #tpu.memory_space<vmem>>, vector<16x128xf32>,
    return
  }
  func.func @transform_0(%arg0: i32, %arg1: i32) -> (i32, i32) {
    %c0_i32 = arith.constant 0 : i32
    %c0_i32_0 = arith.constant 0 : i32
    return %arg0, %c0_i32 : i32, i32
  }
  func.func @transform_1(%arg0: i32, %arg1: i32) -> (i32, i32) {
    %c0_i32 = arith.constant 0 : i32
    %c0_i32_0 = arith.constant 0 : i32
    %c0_i32_1 = arith.constant 0 : i32
    return %c0_i32, %c0_i32_0 : i32, i32
  }
  func.func @transform_2(%arg0: i32, %arg1: i32) -> (i32, i32) {
    %c0_i32 = arith.constant 0 : i32
    %c0_i32_0 = arith.constant 0 : i32
    %c0_i32_1 = arith.constant 0 : i32
    return %c0_i32, %c0_i32_0 : i32, i32
  }
  func.func @transform_3(%arg0: i32, %arg1: i32) -> (i32, i32) {
    %c0_i32 = arith.constant 0 : i32
    %c0_i32_0 = arith.constant 0 : i32
    return %c0_i32, %arg1 : i32, i32
  }
  func.func @transform_4(%arg0: i32, %arg1: i32) -> (i32, i32) {
    %c0_i32 = arith.constant 0 : i32
    %c0_i32_0 = arith.constant 0 : i32
    return %c0_i32, %arg1 : i32, i32
  }
  func.func @transform_5(%arg0: i32, %arg1: i32) -> (i32, i32) {
    %c0_i32 = arith.constant 0 : i32
    return %arg0, %arg1 : i32, i32
  }
}

</mosaic_0001>

<bundles_post_ra>
// kernel: tpu_custom_call.1
= control target key start
LH: loop header
LB: loop body
LE: loop exit
PB: predicated region body
PF: predicated region fallthrough
CT: control target
= control target key end

     0   :  { %10 = vsyncpa [#allocation4], 0  ;;  %s460_s0 = inlined_call_operand.hbm [shape: f32[16,128], index: 0, kind: input, shape index: {}]   ;;  %s461_s1 = inlined_call_operand.vmem [shape: f32[1,128], index: 1, kind: input, shape index: {}]   ;;  %s462_s2 = inlined_call_operand.vmem [shape: f32[1,128], index: 2, kind: input, shape index: {}]   ;;  %s463_s3 = inlined_call_operand.hbm [shape: bf16[128,128], index: 3, kind: input, shape index: {}]   ;;  %s464_s4 = inlined_call_operand.vmem [shape: f32[1,128], index: 4, kind: input, shape index: {}]   ;;  %s465_s5 = inlined_call_operand.hbm [shape: f32[16,128], index: 5, kind: output, shape index: {}]  }
   0x1   :  { %11 = vsyncpa [#allocation7], 0 }
   0x2   :  { %12 = vsyncpa [#allocation5], 0  ;;  %s370_s18 = smov [#allocation3]   ;;  %s298_s22 = scalar_lea.hbm %s460_s0, 256 }
   0x3   :  { %s18_s19 = sshll.u32 %s370_s18, 4  ;;  %p299_p0 = scmp.ne.s32.totalorder %s460_s0, %s298_s22  ;;  %s19_s19 = int_to_ptr.vmem [resolvable:$true] %s18_s19 }
   0x4   :  { %p302_p1 = scmp.lt.u32.totalorder %s298_s22, %s460_s0 }
   0x6   :  { %p304_p2 = pnand %p302_p1, %p299_p0 }
   0x8   :  { %307 = shalt.err (!%p304_p2)
}
   0x9   :  { %s308_s27 = scalar_lea.vmem %s19_s19, 256  ;;  %p313_p4 = scmp.lt.s32.totalorder %s19_s19, %s19_s19 }
   0xa   :  { %p309_p3 = scmp.ne.s32.totalorder %s19_s19, %s308_s27  ;;  %p314_p5 = scmp.lt.s32.totalorder %s308_s27, %s308_s27 }
   0xc   :  { %p315_p6 = por %p314_p5, %p313_p4 }
   0xe   :  { %p316_p7 = pnand %p315_p6, %p309_p3 }
  0x10   :  { %319 = shalt.err (!%p316_p7)
}
  0x11   :  { %s371_s28 = smov 128   ;;  %s372_s29 = smov 8  }
  0x12   :  { %24 = dma.hbm_to_vmem [thread:$0]  %s460_s0, 256, %s19_s19, [#allocation4], %s371_s28, %s371_s28, %s372_s29  }
  0x13   :  { %s373_s7 = smov [#allocation6]   ;;  %s320_s11 = scalar_lea.hbm %s463_s3, 1024 }
  0x14   :  { %s34_s8 = sshll.u32 %s373_s7, 4  ;;  %p321_p8 = scmp.ne.s32.totalorder %s463_s3, %s320_s11  ;;  %s35_s8 = int_to_ptr.vmem [resolvable:$true] %s34_s8 }
  0x15   :  { %p324_p9 = scmp.lt.u32.totalorder %s320_s11, %s463_s3 }
  0x17   :  { %p326_p10 = pnand %p324_p9, %p321_p8 }
  0x19   :  { %329 = shalt.err (!%p326_p10)
}
  0x1a   :  { %s330_s16 = scalar_lea.vmem %s35_s8, 1024  ;;  %p335_p12 = scmp.lt.s32.totalorder %s35_s8, %s35_s8 }
  0x1b   :  { %p331_p11 = scmp.ne.s32.totalorder %s35_s8, %s330_s16  ;;  %p336_p13 = scmp.lt.s32.totalorder %s330_s16, %s330_s16 }
  0x1d   :  { %p337_p0 = por %p336_p13, %p335_p12 }
  0x1f   :  { %p338_p1 = pnand %p337_p0, %p331_p11 }
  0x21   :  { %341 = shalt.err (!%p338_p1)
}
  0x22   :  { %s374_s0 = smov 64   ;;  %s375_s17 = smov 4  }
  0x23   :  { %40 = dma.hbm_to_vmem [thread:$0]  %s463_s3, 1024, %s35_s8, [#allocation7], %s374_s0, %s374_s0, %s375_s17  }
  0x24   :  { %364 = dma.done.wait [#allocation4], 256  }
  0x25   :  { %365 = vsyncadd [#allocation4], 4294967040 }
  0x26   :  { %366 = dma.done.wait [#allocation7], 1024  }
  0x27   :  { %367 = vsyncadd [#allocation7], 4294966272  ;;  %v54_v0 = vld [vmem:[#allocation3] sm:$0xff]  ;;  %v55_v1 = vld [vmem:[#allocation3 + $0x8] sm:$0xff]  ;;  %v376_v3 = vmov 0.0   ;;  %vm377_vm0 = vmmov 0  }
  0x28   :  { %58 = vadd.xlane.f32.xlu0 %v54_v0  ;;  %v286_v2 = vld [vmem:[#allocation6] sm:$0xff]   ;;  %257 = vmatprep.subr.bf16.mxu0 %v376_v3  ;;  %v287_v12 = vld [vmem:[#allocation6 + $0x8] sm:$0xff]   ;;  %v288_v13 = vld [vmem:[#allocation6 + $0x10] sm:$0xff]   ;;  %s378_s25 = smov [#allocation8]  }
  0x29   :  { %258 = vmatpush3.bf16.msra.mxu0 %v286_v2  ;;  %v289_v14 = vld [vmem:[#allocation6 + $0x18] sm:$0xff]   ;;  %v290_v15 = vld [vmem:[#allocation6 + $0x20] sm:$0xff]   ;;  %273 = vmatprep.mubr.msk.bf16.mxu0 %vm377_vm0, %v376_v3  ;;  %v291_v16 = vld [vmem:[#allocation6 + $0x28] sm:$0xff]   ;;  %s224_s26 = sshll.u32 %s378_s25, 4  ;;  %s225_s26 = int_to_ptr.vmem [resolvable:$true] %s224_s26 }
  0x2a   :  { %259 = vmatprep.subr.bf16.mxu0 %v376_v3  ;;  %v292_v17 = vld [vmem:[#allocation6 + $0x30] sm:$0xff]   ;;  %v293_v18 = vld [vmem:[#allocation6 + $0x38] sm:$0xff]   ;;  %p347_p3 = scmp.lt.s32.totalorder %s225_s26, %s225_s26 }
  0x2b   :  { %v237_v33 = vld [vmem:[%s461_s1] ss:$0 sm:$0xff]  ;;  %s342_s1 = scalar_lea.vmem %s225_s26, 256 }
  0x2c   :  { %60 = vadd.xlane.f32.xlu0 %v55_v1  ;;  %v238_v37 = vld [vmem:[%s462_s2] ss:$0 sm:$0xff]  ;;  %p343_p2 = scmp.ne.s32.totalorder %s225_s26, %s342_s1  ;;  %p348_p4 = scmp.lt.s32.totalorder %s342_s1, %s342_s1 }
  0x2d   :  { %260 = vmatpush3.bf16.msra.mxu0 %v287_v12  ;;  %v239_v42 = vld [vmem:[%s464_s4] ss:$0 sm:$0xff] }
  0x2e   :  { %261 = vmatprep.subr.bf16.mxu0 %v376_v3  ;;  %p349_p5 = por %p348_p4, %p347_p3 }
  0x30   :  { %p350_p6 = pnand %p349_p5, %p343_p2 }
  0x31   :  { %262 = vmatpush3.bf16.msra.mxu0 %v288_v13 }
  0x32   :  { %263 = vmatprep.subr.bf16.mxu0 %v376_v3 }
  0x35   :  { %264 = vmatpush3.bf16.msra.mxu0 %v289_v14 }
  0x36   :  { %265 = vmatprep.subr.bf16.mxu0 %v376_v3 }
  0x39   :  { %266 = vmatpush3.bf16.msra.mxu0 %v290_v15 }
  0x3a   :  { %267 = vmatprep.subr.bf16.mxu0 %v376_v3 }
  0x3d   :  { %268 = vmatpush3.bf16.msra.mxu0 %v291_v16 }
  0x3e   :  { %269 = vmatprep.subr.bf16.mxu0 %v376_v3 }
  0x41   :  { %270 = vmatpush3.bf16.msra.mxu0 %v292_v17 }
  0x42   :  { %271 = vmatprep.subr.bf16.mxu0 %v376_v3 }
  0x45   :  { %272 = vmatpush3.bf16.msra.mxu0 %v293_v18 }
  0xb5   :  { %v59_v4 = vpop.xlane.xlu0 %58 }
  0xb6   :  { %v62_v5 = vmul.f32 0.03125, %v59_v4 }
  0xb8   :  { %v64_v6 = vsub.f32 %v54_v0, %v62_v5  ;;  %v72_v19 = vmul.f32 %v62_v5, %v62_v5 }
  0xb9   :  { %v61_v7 = vpop.xlane.xlu0 %60 }
  0xba   :  { %v63_v8 = vmul.f32 0.03125, %v61_v7  ;;  %v66_v9 = vmul.f32 %v64_v6, %v64_v6  ;;  %v74_v21 = vmul.f32 96.0, %v72_v19 }
  0xbc   :  { %v65_v10 = vsub.f32 %v55_v1, %v63_v8  ;;  %68 = vadd.xlane.f32.xlu1 %v66_v9  ;;  %v73_v20 = vmul.f32 %v63_v8, %v63_v8 }
  0xbe   :  { %v67_v11 = vmul.f32 %v65_v10, %v65_v10  ;;  %v75_v24 = vmul.f32 96.0, %v73_v20 }
  0xc0   :  { %70 = vadd.xlane.f32.xlu1 %v67_v11 }
 0x149   :  { %v69_v22 = vpop.xlane.xlu1 %68 }
 0x14a   :  { %v76_v23 = vsub.f32 %v69_v22, %v74_v21 }
 0x14c   :  { %v78_v25 = vmul.f32 0.03125, %v76_v23 }
 0x14d   :  { %v71_v26 = vpop.xlane.xlu1 %70 }
 0x14e   :  { %v80_v27 = vadd.f32 1e-05, %v78_v25  ;;  %v77_v28 = vsub.f32 %v71_v26, %v75_v24 }
 0x150   :  { %294 = vrsqrt.f32 %v80_v27  ;;  %v79_v29 = vmul.f32 0.03125, %v77_v28 }
 0x152   :  { %v81_v30 = vadd.f32 1e-05, %v79_v29 }
 0x154   :  { %296 = vrsqrt.f32 %v81_v30 }
 0x15a   :  { %v295_v31 = vpop.eup %294 }
 0x15b   :  { %v84_v32 = vmul.f32 %v295_v31, %v64_v6 }
 0x15d   :  { %v92_v36 = vmul.f32 %v237_v33, %v84_v32 }
 0x15e   :  { %v297_v34 = vpop.eup %296 }
 0x15f   :  { %v85_v35 = vmul.f32 %v297_v34, %v65_v10  ;;  %v100_v39 = vadd.f32 %v238_v37, %v92_v36 }
 0x161   :  { %v93_v38 = vmul.f32 %v237_v33, %v85_v35 }
 0x163   :  { %v101_v40 = vadd.f32 %v238_v37, %v93_v38 }
 0x165   :  { %v102_v41 = vpack.c.bf16 %v101_v40, %v100_v39 }
 0x167   :  { %274 = vmatmul.mubr.bf16.vlgmr.msra.gmra.mrb[0].mxu0 %v102_v41 }
 0x23a   :  { %v210_v43 = vpop.f32.mrb[0].mxu0 }
 0x23b   :  { %v211_v44 = vadd.f32 %v239_v42, %v210_v43  ;;  %v275_v45 = vpop.f32.mrb[1].mxu0 }
 0x23c   :  { %v213_v46 = vpop.f32.mrb[2].mxu0 }
 0x23d   :  { %217 = vst [vmem:[#allocation8] sm:$0xff] %v211_v44  ;;  %v214_v47 = vadd.f32 %v239_v42, %v213_v46  ;;  %v276_v48 = vpop.f32.mrb[3].mxu0 }
 0x23f   :  { %218 = vst [vmem:[#allocation8 + $0x8] sm:$0xff] %v214_v47 }
 0x240   :  { %353 = shalt.err (!%p350_p6)
}
 0x241   :  { %s354_s27 = scalar_lea.hbm %s465_s5, 256 }
 0x242   :  { %p355_p7 = scmp.ne.s32.totalorder %s465_s5, %s354_s27  ;;  %p358_p8 = scmp.lt.u32.totalorder %s354_s27, %s465_s5 }
 0x244   :  { %p360_p9 = pnand %p358_p8, %p355_p7 }
 0x246   :  { %363 = shalt.err (!%p360_p9)
}
 0x247   :  { %230 = dma.vmem_to_hbm [thread:$0]  %s225_s26, 256, %s465_s5, [#allocation5], %s371_s28, %s371_s28, %s372_s29  }
 0x248   :  { %368 = dma.done.wait [#allocation5], 256  }
 0x249   :  { %369 = vsyncadd [#allocation5], 4294967040 }
 0x24a   :  { %234 = vsyncpa [#allocation4], 1 }
 0x24b   :  { %235 = vsyncpa [#allocation7], 1 }
 0x24c   :  { %236 = vsyncpa [#allocation5], 1 }

// kernel: tpu_custom_call.1
= control target key start
LH: loop header
LB: loop body
LE: loop exit
PB: predicated region body
PF: predicated region fallthrough
CT: control target
= control target key end

     0   :  { %10 = vsyncpa [#allocation4], 0  ;;  %s460_s0 = inlined_call_operand.hbm [shape: f32[16,128], index: 0, kind: input, shape index: {}]   ;;  %s461_s1 = inlined_call_operand.vmem [shape: f32[1,128], index: 1, kind: input, shape index: {}]   ;;  %s462_s2 = inlined_call_operand.vmem [shape: f32[1,128], index: 2, kind: input, shape index: {}]   ;;  %s463_s3 = inlined_call_operand.hbm [shape: bf16[128,128], index: 3, kind: input, shape index: {}]   ;;  %s464_s4 = inlined_call_operand.vmem [shape: f32[1,128], index: 4, kind: input, shape index: {}]   ;;  %s465_s5 = inlined_call_operand.hbm [shape: f32[16,128], index: 5, kind: output, shape index: {}]  }
   0x1   :  { %11 = vsyncpa [#allocation7], 0 }
   0x2   :  { %12 = vsyncpa [#allocation5], 0  ;;  %s370_s18 = smov [#allocation3]   ;;  %s298_s22 = scalar_lea.hbm %s460_s0, 256 }
   0x3   :  { %s18_s19 = sshll.u32 %s370_s18, 4  ;;  %p299_p0 = scmp.ne.s32.totalorder %s460_s0, %s298_s22  ;;  %s19_s19 = int_to_ptr.vmem [resolvable:$true] %s18_s19 }
   0x4   :  { %p302_p1 = scmp.lt.u32.totalorder %s298_s22, %s460_s0 }
   0x6   :  { %p304_p2 = pnand %p302_p1, %p299_p0 }
   0x8   :  { %307 = shalt.err (!%p304_p2)
}
   0x9   :  { %s308_s27 = scalar_lea.vmem %s19_s19, 256  ;;  %p313_p4 = scmp.lt.s32.totalorder %s19_s19, %s19_s19 }
   0xa   :  { %p309_p3 = scmp.ne.s32.totalorder %s19_s19, %s308_s27  ;;  %p314_p5 = scmp.lt.s32.totalorder %s308_s27, %s308_s27 }
   0xc   :  { %p315_p6 = por %p314_p5, %p313_p4 }
   0xe   :  { %p316_p7 = pnand %p315_p6, %p309_p3 }
  0x10   :  { %319 = shalt.err (!%p316_p7)
}
  0x11   :  { %s371_s28 = smov 128   ;;  %s372_s29 = smov 8  }
  0x12   :  { %24 = dma.hbm_to_vmem [thread:$0]  %s460_s0, 256, %s19_s19, [#allocation4], %s371_s28, %s371_s28, %s372_s29  }
  0x13   :  { %s373_s7 = smov [#allocation6]   ;;  %s320_s11 = scalar_lea.hbm %s463_s3, 1024 }
  0x14   :  { %s34_s8 = sshll.u32 %s373_s7, 4  ;;  %p321_p8 = scmp.ne.s32.totalorder %s463_s3, %s320_s11  ;;  %s35_s8 = int_to_ptr.vmem [resolvable:$true] %s34_s8 }
  0x15   :  { %p324_p9 = scmp.lt.u32.totalorder %s320_s11, %s463_s3 }
  0x17   :  { %p326_p10 = pnand %p324_p9, %p321_p8 }
  0x19   :  { %329 = shalt.err (!%p326_p10)
}
  0x1a   :  { %s330_s16 = scalar_lea.vmem %s35_s8, 1024  ;;  %p335_p12 = scmp.lt.s32.totalorder %s35_s8, %s35_s8 }
  0x1b   :  { %p331_p11 = scmp.ne.s32.totalorder %s35_s8, %s330_s16  ;;  %p336_p13 = scmp.lt.s32.totalorder %s330_s16, %s330_s16 }
  0x1d   :  { %p337_p0 = por %p336_p13, %p335_p12 }
  0x1f   :  { %p338_p1 = pnand %p337_p0, %p331_p11 }
  0x21   :  { %341 = shalt.err (!%p338_p1)
}
  0x22   :  { %s374_s0 = smov 64   ;;  %s375_s17 = smov 4  }
  0x23   :  { %40 = dma.hbm_to_vmem [thread:$0]  %s463_s3, 1024, %s35_s8, [#allocation7], %s374_s0, %s374_s0, %s375_s17  }
  0x24   :  { %364 = dma.done.wait [#allocation4], 256  }
  0x25   :  { %365 = vsyncadd [#allocation4], 4294967040 }
  0x26   :  { %366 = dma.done.wait [#allocation7], 1024  }
  0x27   :  { %367 = vsyncadd [#allocation7], 4294966272  ;;  %v54_v0 = vld [vmem:[#allocation3] sm:$0xff]  ;;  %v55_v1 = vld [vmem:[#allocation3 + $0x8] sm:$0xff]  ;;  %v376_v3 = vmov 0.0   ;;  %vm377_vm0 = vmmov 0  }
  0x28   :  { %58 = vadd.xlane.f32.xlu0 %v54_v0  ;;  %v286_v2 = vld [vmem:[#allocation6] sm:$0xff]   ;;  %257 = vmatprep.subr.bf16.mxu0 %v376_v3  ;;  %v287_v12 = vld [vmem:[#allocation6 + $0x8] sm:$0xff]   ;;  %v288_v13 = vld [vmem:[#allocation6 + $0x10] sm:$0xff]   ;;  %s378_s25 = smov [#allocation8]  }
  0x29   :  { %258 = vmatpush3.bf16.msra.mxu0 %v286_v2  ;;  %v289_v14 = vld [vmem:[#allocation6 + $0x18] sm:$0xff]   ;;  %v290_v15 = vld [vmem:[#allocation6 + $0x20] sm:$0xff]   ;;  %273 = vmatprep.mubr.msk.bf16.mxu0 %vm377_vm0, %v376_v3  ;;  %v291_v16 = vld [vmem:[#allocation6 + $0x28] sm:$0xff]   ;;  %s224_s26 = sshll.u32 %s378_s25, 4  ;;  %s225_s26 = int_to_ptr.vmem [resolvable:$true] %s224_s26 }
  0x2a   :  { %259 = vmatprep.subr.bf16.mxu0 %v376_v3  ;;  %v292_v17 = vld [vmem:[#allocation6 + $0x30] sm:$0xff]   ;;  %v293_v18 = vld [vmem:[#allocation6 + $0x38] sm:$0xff]   ;;  %p347_p3 = scmp.lt.s32.totalorder %s225_s26, %s225_s26 }
  0x2b   :  { %v237_v33 = vld [vmem:[%s461_s1] ss:$0 sm:$0xff]  ;;  %s342_s1 = scalar_lea.vmem %s225_s26, 256 }
  0x2c   :  { %60 = vadd.xlane.f32.xlu0 %v55_v1  ;;  %v238_v37 = vld [vmem:[%s462_s2] ss:$0 sm:$0xff]  ;;  %p343_p2 = scmp.ne.s32.totalorder %s225_s26, %s342_s1  ;;  %p348_p4 = scmp.lt.s32.totalorder %s342_s1, %s342_s1 }
  0x2d   :  { %260 = vmatpush3.bf16.msra.mxu0 %v287_v12  ;;  %v239_v42 = vld [vmem:[%s464_s4] ss:$0 sm:$0xff] }
  0x2e   :  { %261 = vmatprep.subr.bf16.mxu0 %v376_v3  ;;  %p349_p5 = por %p348_p4, %p347_p3 }
  0x30   :  { %p350_p6 = pnand %p349_p5, %p343_p2 }
  0x31   :  { %262 = vmatpush3.bf16.msra.mxu0 %v288_v13 }
  0x32   :  { %263 = vmatprep.subr.bf16.mxu0 %v376_v3 }
  0x35   :  { %264 = vmatpush3.bf16.msra.mxu0 %v289_v14 }
  0x36   :  { %265 = vmatprep.subr.bf16.mxu0 %v376_v3 }
  0x39   :  { %266 = vmatpush3.bf16.msra.mxu0 %v290_v15 }
  0x3a   :  { %267 = vmatprep.subr.bf16.mxu0 %v376_v3 }
  0x3d   :  { %268 = vmatpush3.bf16.msra.mxu0 %v291_v16 }
  0x3e   :  { %269 = vmatprep.subr.bf16.mxu0 %v376_v3 }
  0x41   :  { %270 = vmatpush3.bf16.msra.mxu0 %v292_v17 }
  0x42   :  { %271 = vmatprep.subr.bf16.mxu0 %v376_v3 }
  0x45   :  { %272 = vmatpush3.bf16.msra.mxu0 %v293_v18 }
  0xb5   :  { %v59_v4 = vpop.xlane.xlu0 %58 }
  0xb6   :  { %v62_v5 = vmul.f32 0.03125, %v59_v4 }
  0xb8   :  { %v64_v6 = vsub.f32 %v54_v0, %v62_v5  ;;  %v72_v19 = vmul.f32 %v62_v5, %v62_v5 }
  0xb9   :  { %v61_v7 = vpop.xlane.xlu0 %60 }
  0xba   :  { %v63_v8 = vmul.f32 0.03125, %v61_v7  ;;  %v66_v9 = vmul.f32 %v64_v6, %v64_v6  ;;  %v74_v21 = vmul.f32 96.0, %v72_v19 }
  0xbc   :  { %v65_v10 = vsub.f32 %v55_v1, %v63_v8  ;;  %68 = vadd.xlane.f32.xlu1 %v66_v9  ;;  %v73_v20 = vmul.f32 %v63_v8, %v63_v8 }
  0xbe   :  { %v67_v11 = vmul.f32 %v65_v10, %v65_v10  ;;  %v75_v24 = vmul.f32 96.0, %v73_v20 }
  0xc0   :  { %70 = vadd.xlane.f32.xlu1 %v67_v11 }
 0x149   :  { %v69_v22 = vpop.xlane.xlu1 %68 }
 0x14a   :  { %v76_v23 = vsub.f32 %v69_v22, %v74_v21 }
 0x14c   :  { %v78_v25 = vmul.f32 0.03125, %v76_v23 }
 0x14d   :  { %v71_v26 = vpop.xlane.xlu1 %70 }
 0x14e   :  { %v80_v27 = vadd.f32 1e-05, %v78_v25  ;;  %v77_v28 = vsub.f32 %v71_v26, %v75_v24 }
 0x150   :  { %294 = vrsqrt.f32 %v80_v27  ;;  %v79_v29 = vmul.f32 0.03125, %v77_v28 }
 0x152   :  { %v81_v30 = vadd.f32 1e-05, %v79_v29 }
 0x154   :  { %296 = vrsqrt.f32 %v81_v30 }
 0x15a   :  { %v295_v31 = vpop.eup %294 }
 0x15b   :  { %v84_v32 = vmul.f32 %v295_v31, %v64_v6 }
 0x15d   :  { %v92_v36 = vmul.f32 %v237_v33, %v84_v32 }
 0x15e   :  { %v297_v34 = vpop.eup %296 }
 0x15f   :  { %v85_v35 = vmul.f32 %v297_v34, %v65_v10  ;;  %v100_v39 = vadd.f32 %v238_v37, %v92_v36 }
 0x161   :  { %v93_v38 = vmul.f32 %v237_v33, %v85_v35 }
 0x163   :  { %v101_v40 = vadd.f32 %v238_v37, %v93_v38 }
 0x165   :  { %v102_v41 = vpack.c.bf16 %v101_v40, %v100_v39 }
 0x167   :  { %274 = vmatmul.mubr.bf16.vlgmr.msra.gmra.mrb[0].mxu0 %v102_v41 }
 0x23a   :  { %v210_v43 = vpop.f32.mrb[0].mxu0 }
 0x23b   :  { %v211_v44 = vadd.f32 %v239_v42, %v210_v43  ;;  %v275_v45 = vpop.f32.mrb[1].mxu0 }
 0x23c   :  { %v213_v46 = vpop.f32.mrb[2].mxu0 }
 0x23d   :  { %217 = vst [vmem:[#allocation8] sm:$0xff] %v211_v44  ;;  %v214_v47 = vadd.f32 %v239_v42, %v213_v46  ;;  %v276_v48 = vpop.f32.mrb[3].mxu0 }
 0x23f   :  { %218 = vst [vmem:[#allocation8 + $0x8] sm:$0xff] %v214_v47 }
 0x240   :  { %353 = shalt.err (!%p350_p6)
}
 0x241   :  { %s354_s27 = scalar_lea.hbm %s465_s5, 256 }
 0x242   :  { %p355_p7 = scmp.ne.s32.totalorder %s465_s5, %s354_s27  ;;  %p358_p8 = scmp.lt.u32.totalorder %s354_s27, %s465_s5 }
 0x244   :  { %p360_p9 = pnand %p358_p8, %p355_p7 }
 0x246   :  { %363 = shalt.err (!%p360_p9)
}
 0x247   :  { %230 = dma.vmem_to_hbm [thread:$0]  %s225_s26, 256, %s465_s5, [#allocation5], %s371_s28, %s371_s28, %s372_s29  }
 0x248   :  { %368 = dma.done.wait [#allocation5], 256  }
 0x249   :  { %369 = vsyncadd [#allocation5], 4294967040 }
 0x24a   :  { %234 = vsyncpa [#allocation4], 1 }
 0x24b   :  { %235 = vsyncpa [#allocation7], 1 }
 0x24c   :  { %236 = vsyncpa [#allocation5], 1 }

</bundles_post_ra>
